<compile_context>
chip_gen: v6e
topology: v6e:2x2x1
jax: 0.10.0
libtpu: 0.0.40
codegen_flags: <defaults>
</compile_context>

<pallas_src>
import numpy as np
import jax
import jax.numpy as jnp
from jax.experimental import pallas as pl
from jax.experimental.pallas import tpu as pltpu

_LANES = 128
_TARGET_TILE_BYTES = 2 * 1024 * 1024      # ~2 MiB per stream per buffer
_VMEM_LIMIT_BYTES = 32 * 1024 * 1024      # covers ~12 MiB double-buffered worst case
_SUBLANE_PACK = {4: 8, 2: 16, 1: 32}      # sublane packing multiple per itemsize


def make_sinusoid_table(n_position: int, d_hid: int, dtype=jnp.float32) -> jnp.ndarray:
    """Deterministic sinusoid encoding table, identical to the PyTorch buffer.

    Build it at the activation dtype to avoid a per-forward full-table cast.
    """
    positions = np.arange(n_position)[:, None]                     # (P, 1)
    hid_j = np.arange(d_hid)[None, :]                              # (1, D)
    angle = positions / np.power(10000.0, 2.0 * (hid_j // 2) / d_hid)
    table = np.array(angle, dtype=np.float64)
    table[:, 0::2] = np.sin(table[:, 0::2])
    table[:, 1::2] = np.cos(table[:, 1::2])
    return jnp.asarray(table[None, :, :], dtype=dtype)             # (1, P, D)


def _add_pos_kernel(x_ref, pos_ref, o_ref):
    # (bb, tr, 128) + (1, tr, 128) broadcast add — pure VPU, lane-dense stores.
    o_ref[...] = x_ref[...] + pos_ref[...]


def _add_lane_dense(x2: jnp.ndarray, pos2: jnp.ndarray) -> jnp.ndarray:
    """x2: (B, R, 128); pos2: (1, Rp, 128), Rp >= R (Rp == R whenever R < pack)."""
    B, R, _ = x2.shape
    itemsize = jnp.dtype(x2.dtype).itemsize
    pack = _SUBLANE_PACK.get(itemsize, 8)

    if R < pack:
        # Full-extent row block (block == full dim is always legal). Caller
        # guarantees pos2 has exactly R rows on this path.
        tr = R
    else:
        target_rows = max(pack,
                          (_TARGET_TILE_BYTES // (_LANES * itemsize) // pack) * pack)
        tr = min(target_rows, (R // pack) * pack)

    # Fold batches into the block until each x/out block is ~_TARGET_TILE_BYTES,
    # amortizing the ~0.35 us/grid-step overhead on small-R / large-B shapes.
    row_bytes = tr * _LANES * itemsize
    bb = int(min(B, max(1, _TARGET_TILE_BYTES // row_bytes)))

    # Batch innermost: pos block index is constant along it -> table DMA elided.
    grid = (pl.cdiv(R, tr), pl.cdiv(B, bb))

    cost = pl.CostEstimate(
        flops=B * R * _LANES,
        transcendentals=0,
        bytes_accessed=(2 * B * R + min(R, pos2.shape[1])) * _LANES * itemsize,
    )

    return pl.pallas_call(
        _add_pos_kernel,
        out_shape=jax.ShapeDtypeStruct((B, R, _LANES), x2.dtype),
        grid_spec=pltpu.PrefetchScalarGridSpec(
            num_scalar_prefetch=0,
            grid=grid,
            in_specs=[
                pl.BlockSpec((bb, tr, _LANES), lambda r, b: (b, r, 0)),  # x tile
                pl.BlockSpec((1, tr, _LANES), lambda r, b: (0, r, 0)),   # pos window
            ],
            out_specs=pl.BlockSpec((bb, tr, _LANES), lambda r, b: (b, r, 0)),
        ),
        compiler_params=pltpu.CompilerParams(
            # Both axes parallel so v7x's 2 TCs can shard whichever axis has
            # >1 iteration (row_tiles is often 1 for short sequences).
            dimension_semantics=("parallel", "parallel"),
            vmem_limit_bytes=_VMEM_LIMIT_BYTES,
        ),
        cost_estimate=cost,
    )(x2, pos2)


def positional_encoding_forward(x: jnp.ndarray, pos_table: jnp.ndarray) -> jnp.ndarray:
    """x: (B, L, D); pos_table: (1, n_position, D). Returns x + pos_table[:, :L]."""
    B, L, D = x.shape
    _, P, Dp = pos_table.shape
    assert Dp == D and L <= P

    # Prefer a table built at the activation dtype (make_sinusoid_table(dtype=...));
    # only cast if it mismatches, so there is no per-call full-table cast op.
    pos = pos_table if pos_table.dtype == x.dtype else pos_table.astype(x.dtype)

    itemsize = jnp.dtype(x.dtype).itemsize
    pack = _SUBLANE_PACK.get(itemsize, 8)
    N = L * D

    if N % _LANES == 0:
        R = N // _LANES
        x2 = x.reshape(B, R, _LANES)      # contiguous reshape: no copy
        if R >= pack and (P * D) % _LANES == 0:
            # Window the full table via the BlockSpec index_map — no slice copy.
            pos2 = pos.reshape(1, (P * D) // _LANES, _LANES)
        else:
            # Tiny problem (or ragged table): exact-extent pos block required.
            pos2 = jax.lax.slice(pos, (0, 0, 0), (1, L, D)).reshape(1, R, _LANES)
        out2 = _add_lane_dense(x2, pos2)
        return out2.reshape(B, L, D)

    # (L*D) % 128 != 0: pad the flattened features once, run the same
    # lane-dense kernel (full-width unmasked stores), then slice the result.
    R = -(-N // _LANES)
    Np = R * _LANES
    xf = jnp.pad(x.reshape(B, N), ((0, 0), (0, Np - N)))
    pf = jnp.pad(jax.lax.slice(pos, (0, 0, 0), (1, L, D)).reshape(1, N),
                 ((0, 0), (0, Np - N)))
    out2 = _add_lane_dense(xf.reshape(B, R, _LANES), pf.reshape(1, R, _LANES))
    return out2.reshape(B, Np)[:, :N].reshape(B, L, D)


def _check(B, L, D, n_position, key, dtype=jnp.float32, rtol=1e-6, atol=1e-6):
    table = make_sinusoid_table(n_position, D, dtype=dtype)
    x = jax.random.normal(key, (B, L, D), dtype=jnp.float32).astype(dtype)
    out = jax.block_until_ready(positional_encoding_forward(x, table))
    assert out.shape == (B, L, D)
    ref = np.asarray(x, dtype=np.float32) + np.asarray(table, dtype=np.float32)[:, :L]
    np.testing.assert_allclose(np.asarray(out, dtype=np.float32), ref,
                               rtol=rtol, atol=atol)


if __name__ == "__main__":
    key = jax.random.PRNGKey(0)
    k0, k1, k2, k3 = jax.random.split(key, 4)

    # Module-consistent toy shape (tiny R: full-extent block + batch folding).
    _check(B=2, L=8, D=32, n_position=200, key=k0)
    # Lane-dense tiled path with full-table windowing (R >= 8, f32 pack=8).
    _check(B=2, L=16, D=64, n_position=200, key=k1)
    # Multiple row tiles + partial edge block + pos-block DMA elision.
    _check(B=2, L=24, D=64, n_position=200, key=k2)
    # bf16 path: dtype-aware (16,128) packing, no per-call table cast.
    _check(B=4, L=32, D=64, n_position=200, key=k3,
           dtype=jnp.bfloat16, rtol=2e-2, atol=2e-2)
    # Padded fallback: (L*D) % 128 != 0 routed through the lane-dense path.
    _check(B=2, L=8, D=36, n_position=200, key=k0)

    print("KERNEL_OK")
</pallas_src>

<mosaic_0001>
module attributes {stable_mosaic.version = 11 : i64} {
  func.func @_add_pos_kernel(%arg0: i32, %arg1: i32, %arg2: memref<2x2x128xf32, #tpu.memory_space<vmem>>, %arg3: memref<1x2x128xf32, #tpu.memory_space<vmem>>, %arg4: memref<2x2x128xf32, #tpu.memory_space<vmem>>) attributes {dimension_semantics = [#tpu.dimension_semantics<parallel>, #tpu.dimension_semantics<parallel>], iteration_bounds = array<i64: 1, 1>, scalar_prefetch = 0 : i64, scratch_operands = 0 : i64, tpu.core_type = #tpu.core_type<tc>, window_params = [{transform_indices = @transform_0, window_bounds = array<i64: 2, 2, 128>}, {transform_indices = @transform_1, window_bounds = array<i64: 1, 2, 128>}, {transform_indices = @transform_2, window_bounds = array<i64: 2, 2, 128>}]} {
    %c0 = arith.constant 0 : index
    %c0_0 = arith.constant 0 : index
    %c0_1 = arith.constant 0 : index
    %0 = vector.load %arg2[%c0, %c0_0, %c0_1] : memref<2x2x128xf32, #tpu.memory_space<vmem>>, vector<2x2x128xf32>
    %c0_2 = arith.constant 0 : index
    %c0_3 = arith.constant 0 : index
    %c0_4 = arith.constant 0 : index
    %1 = vector.load %arg3[%c0_2, %c0_3, %c0_4] : memref<1x2x128xf32, #tpu.memory_space<vmem>>, vector<1x2x128xf32>
    %2 = vector.broadcast %1 : vector<1x2x128xf32> to vector<2x2x128xf32>
    %3 = arith.addf %0, %2 : vector<2x2x128xf32>
    %c0_5 = arith.constant 0 : index
    %c0_6 = arith.constant 0 : index
    %c0_7 = arith.constant 0 : index
    %4 = vector.load %arg4[%c0_5, %c0_6, %c0_7] : memref<2x2x128xf32, #tpu.memory_space<vmem>>, vector<2x2x128xf32>
    tpu.vector_store %arg4[%c0_5, %c0_6, %c0_7], %3 {strides = array<i32>} : memref<2x2x128xf32, #tpu.memory_space<vmem>>, vector<2x2x128xf32>,
    return
  }
  func.func @transform_0(%arg0: i32, %arg1: i32) -> (i32, i32, i32) {
    %c0_i32 = arith.constant 0 : i32
    %c0_i32_0 = arith.constant 0 : i32
    return %arg1, %arg0, %c0_i32 : i32, i32, i32
  }
  func.func @transform_1(%arg0: i32, %arg1: i32) -> (i32, i32, i32) {
    %c0_i32 = arith.constant 0 : i32
    %c0_i32_0 = arith.constant 0 : i32
    %c0_i32_1 = arith.constant 0 : i32
    return %c0_i32, %arg0, %c0_i32_0 : i32, i32, i32
  }
  func.func @transform_2(%arg0: i32, %arg1: i32) -> (i32, i32, i32) {
    %c0_i32 = arith.constant 0 : i32
    %c0_i32_0 = arith.constant 0 : i32
    return %arg1, %arg0, %c0_i32 : i32, i32, i32
  }
}

</mosaic_0001>

<bundles_post_ra>
// kernel: tpu_custom_call.1
= control target key start
LH: loop header
LB: loop body
LE: loop exit
PB: predicated region body
PF: predicated region fallthrough
CT: control target
= control target key end

     0   :  { %7 = vsyncpa [#allocation3], 0  ;;  %s169_s0 = inlined_call_operand.hbm [shape: f32[2,2,128], index: 0, kind: input, shape index: {}]   ;;  %s170_s1 = inlined_call_operand.hbm [shape: f32[1,2,128], index: 1, kind: input, shape index: {}]   ;;  %s171_s2 = inlined_call_operand.hbm [shape: f32[2,2,128], index: 2, kind: output, shape index: {}]  }
   0x1   :  { %8 = vsyncpa [#allocation6], 0 }
   0x2   :  { %9 = vsyncpa [#allocation4], 0  ;;  %s134_s9 = smov [#allocation2]  }
   0x3   :  { %s15_s10 = sshll.u32 %s134_s9, 4  ;;  %s16_s10 = int_to_ptr.vmem [resolvable:$true] %s15_s10 }
   0x4   :  { %s76_s11 = scalar_lea.vmem %s16_s10, 64  ;;  %p81_p1 = scmp.lt.s32.totalorder %s16_s10, %s16_s10 }
   0x5   :  { %p77_p0 = scmp.ne.s32.totalorder %s16_s10, %s76_s11  ;;  %p82_p2 = scmp.lt.s32.totalorder %s76_s11, %s76_s11 }
   0x7   :  { %p83_p3 = por %p82_p2, %p81_p1 }
   0x9   :  { %p84_p4 = pnand %p83_p3, %p77_p0 }
   0xb   :  { %87 = shalt.err (!%p84_p4)
}
   0xc   :  { %s135_s12 = smov 32   ;;  %s136_s13 = smov 2  }
   0xd   :  { %21 = dma.hbm_to_vmem [thread:$0]  %s169_s0, 64, %s16_s10, [#allocation3], %s135_s12, %s135_s12, %s136_s13  }
   0xe   :  { %s137_s16 = smov [#allocation5]  }
   0xf   :  { %s28_s17 = sshll.u32 %s137_s16, 4  ;;  %s29_s17 = int_to_ptr.vmem [resolvable:$true] %s28_s17 }
  0x10   :  { %s96_s18 = scalar_lea.vmem %s29_s17, 32  ;;  %p101_p6 = scmp.lt.s32.totalorder %s29_s17, %s29_s17 }
  0x11   :  { %p97_p5 = scmp.ne.s32.totalorder %s29_s17, %s96_s18  ;;  %p102_p7 = scmp.lt.s32.totalorder %s96_s18, %s96_s18 }
  0x13   :  { %p103_p8 = por %p102_p7, %p101_p6 }
  0x15   :  { %p104_p9 = pnand %p103_p8, %p97_p5 }
  0x17   :  { %107 = shalt.err (!%p104_p9)
}
  0x18   :  { %31 = dma.hbm_to_vmem [thread:$0]  %s170_s1, 32, %s29_s17, [#allocation6]  }
  0x19   :  { %128 = dma.done.wait [#allocation3], 64  }
  0x1a   :  { %129 = vsyncadd [#allocation3], 4294967232 }
  0x1b   :  { %130 = dma.done.wait [#allocation6], 32  }
  0x1c   :  { %131 = vsyncadd [#allocation6], 4294967264  ;;  %s138_s21 = smov [#allocation7]   ;;  %v38_v0 = vld [vmem:[#allocation2] sm:$0x3] }
  0x1d   :  { %s50_s0 = sshll.u32 %s138_s21, 4  ;;  %v40_v1 = vld [vmem:[#allocation5] sm:$0x3]  ;;  %v39_v2 = vld [vmem:[#allocation2 + $0x2] sm:$0x3]  ;;  %s51_s0 = int_to_ptr.vmem [resolvable:$true] %s50_s0 }
  0x1e   :  { %v41_v3 = vadd.f32 %v40_v1, %v38_v0  ;;  %v42_v4 = vadd.f32 %v40_v1, %v39_v2  ;;  %s108_s22 = scalar_lea.vmem %s51_s0, 64  ;;  %p113_p11 = scmp.lt.s32.totalorder %s51_s0, %s51_s0 }
  0x1f   :  { %p109_p10 = scmp.ne.s32.totalorder %s51_s0, %s108_s22  ;;  %p114_p12 = scmp.lt.s32.totalorder %s108_s22, %s108_s22 }
  0x20   :  { %43 = vst [vmem:[#allocation7] sm:$0x3] %v41_v3  ;;  %44 = vst [vmem:[#allocation7 + $0x2] sm:$0x3] %v42_v4 }
  0x21   :  { %p115_p13 = por %p114_p12, %p113_p11 }
  0x23   :  { %p116_p0 = pnand %p115_p13, %p109_p10 }
  0x25   :  { %119 = shalt.err (!%p116_p0)
}
  0x26   :  { %56 = dma.vmem_to_hbm [thread:$0]  %s51_s0, 64, %s171_s2, [#allocation4], %s135_s12, %s135_s12, %s136_s13  }
  0x27   :  { %132 = dma.done.wait [#allocation4], 64  }
  0x28   :  { %133 = vsyncadd [#allocation4], 4294967232 }
  0x29   :  { %60 = vsyncpa [#allocation3], 1 }
  0x2a   :  { %61 = vsyncpa [#allocation6], 1 }
  0x2b   :  { %62 = vsyncpa [#allocation4], 1 }

</bundles_post_ra>
